<compile_context>
chip_gen: v7x
topology: tpu7x:2x2x1
jax: 0.10.0
libtpu: 0.0.40
codegen_flags: <defaults>
</compile_context>

<pallas_src>
import functools

import jax
import jax.numpy as jnp
import numpy as np
from jax import lax
from jax.experimental import pallas as pl
from jax.experimental.pallas import tpu as pltpu

HIDDEN_DIM = 116
INPUT_DIM = 50
LAYER_DIM = 1          # single layer is what the kernel implements
OUTPUT_DIM = 50


def _round_up(n, m):
    return ((n + m - 1) // m) * m


def _choose_batch_tile(bp):
    """Batch rows handled per grid step (bp is the 8-padded batch).

    Bigger tiles amortize the MXU pipeline latency of the serial h@W_hh
    matmul; but when the padded batch is large enough we keep >= 2 tiles so
    the 'parallel' grid axis can feed both v7x TensorCores.
    """
    bt = min(bp, 128)
    while bp % bt:                 # bp is a multiple of 8 -> terminates at >= 8
        bt -= 8
    if bp // bt == 1 and bp >= 16:
        half = bp // 2
        if half % 8 == 0:
            bt = half              # two tiles for megacore sharding
    return bt


def rnn_kernel(x_ref, wih_ref, whh_ref, brnn_ref, wfc_ref, bfc_ref,
               out_ref, pre_ref, *, seq_len, batch_tile, unroll):
    """One grid step == the FULL sequence for one batch tile.

    x_ref    : (S*BT, Din_p)  bf16   rows ordered t-major then batch row
    wih_ref  : (Din_p, H_p)   bf16   W_ih^T (zero padded)
    whh_ref  : (H_p, H_p)     bf16   W_hh^T (zero padded)
    brnn_ref : (1, H_p)       f32    b_ih + b_hh (zero padded)
    wfc_ref  : (H_p, Dout_p)  bf16   W_fc^T (zero padded)
    bfc_ref  : (1, Dout_p)    f32    b_fc (zero padded)
    out_ref  : (S*BT, Dout_p) f32
    pre_ref  : (S*BT, H_p)    f32 scratch; holds the hoisted input projection,
               then gets overwritten in place with the hidden states (pre[t]
               is dead after step t).
    """
    # ---- Phase 1: hoisted input projection for every timestep (one big MXU
    # matmul instead of S tiny ones). ------------------------------------------
    pre_ref[...] = (
        jnp.dot(x_ref[...], wih_ref[...], preferred_element_type=jnp.float32)
        + brnn_ref[...])

    # Hold W_hh as a value across the loop (8 vregs at H_p=128); the serial
    # chain then never re-loads it from VMEM.
    whh = whh_ref[...]

    # ---- Phase 2: serial recurrence.  Only (BT, H)@(H, H) stays in the loop;
    # carry is a loop-carried VALUE (vreg-resident), f32, cast to bf16 only as
    # the MXU operand.  h_t overwrites pre[t] in place. -------------------------
    h0 = jnp.zeros((batch_tile, whh.shape[1]), jnp.float32)

    def step(t, h):
        r = pl.multiple_of(t * batch_tile, batch_tile)   # sublane-aligned rows
        hh = jnp.dot(h.astype(jnp.bfloat16), whh,
                     preferred_element_type=jnp.float32)
        h_new = jnp.maximum(pre_ref[pl.ds(r, batch_tile), :] + hh, 0.0)
        pre_ref[pl.ds(r, batch_tile), :] = h_new         # alias: pre[t] is dead
        return h_new

    lax.fori_loop(0, seq_len, step, h0, unroll=unroll)

    # ---- Phase 3: hoisted FC projection over all timesteps (module's extra
    # ReLU is idempotent on the already-ReLU'd hidden states, so it is dropped).
    out_ref[...] = (
        jnp.dot(pre_ref[...].astype(jnp.bfloat16), wfc_ref[...],
                preferred_element_type=jnp.float32)
        + bfc_ref[...])


def rnn_forward(x, params):
    """x: (batch, seq, input_dim) f32  ->  (batch, seq, output_dim) f32."""
    w_ih, w_hh, b_ih, b_hh, w_fc, b_fc = params
    B, S, D_in = x.shape
    H = w_ih.shape[0]
    D_out = w_fc.shape[0]

    BP = _round_up(B, 8)               # padded batch (sublane multiple)
    BT = _choose_batch_tile(BP)        # batch rows per grid step
    nb = BP // BT                      # batch tiles == parallel grid steps
    DIP = _round_up(D_in, 128)         # 128
    HP = _round_up(H, 128)             # 128
    DOP = _round_up(D_out, 128)        # 128

    # ---- Pad + lay out x as (nb, S*BT, DIP), bf16, rows t-major per tile. ----
    xp = jnp.zeros((BP, S, DIP), jnp.bfloat16)
    xp = xp.at[:B, :, :D_in].set(x.astype(jnp.bfloat16))
    x_blk = (xp.reshape(nb, BT, S, DIP)
               .transpose(0, 2, 1, 3)
               .reshape(nb, S * BT, DIP))

    # ---- Zero-padded, pre-transposed weights (exact: padded rows/cols are 0).
    wih_t = jnp.zeros((DIP, HP), jnp.bfloat16).at[:D_in, :H].set(
        w_ih.T.astype(jnp.bfloat16))
    whh_t = jnp.zeros((HP, HP), jnp.bfloat16).at[:H, :H].set(
        w_hh.T.astype(jnp.bfloat16))
    brnn = jnp.zeros((1, HP), jnp.float32).at[0, :H].set(
        (b_ih + b_hh).astype(jnp.float32))
    wfc_t = jnp.zeros((HP, DOP), jnp.bfloat16).at[:H, :D_out].set(
        w_fc.T.astype(jnp.bfloat16))
    bfc = jnp.zeros((1, DOP), jnp.float32).at[0, :D_out].set(
        b_fc.astype(jnp.float32))

    unroll = True if S <= 16 else 8    # bounded unroll for long sequences
    kernel = functools.partial(rnn_kernel, seq_len=S, batch_tile=BT,
                               unroll=unroll)

    # Resident VMEM estimate (x/out double-buffered by the pipeline, weights
    # constant-index, pre/hidden scratch single copy). Capped v7x-safe.
    # TODO(synk): for very large S*BT, block the S*BT (time) row axis of
    # x/out/pre (nested emit_pipeline over time chunks) instead of keeping the
    # whole sequence resident.
    vmem_bytes = (
        2 * (S * BT * DIP * 2)                     # x, bf16, double-buffered
        + 2 * (S * BT * DOP * 4)                   # out, f32, double-buffered
        + S * BT * HP * 4                          # pre/hidden scratch
        + 2 * ((DIP * HP + HP * HP + HP * DOP) * 2 # weights (bf16)
               + (HP + DOP) * 4))                  # biases (f32)
    vmem_limit = int(min(max(2 * vmem_bytes, 8 << 20), 48 << 20))

    out_blk = pl.pallas_call(
        kernel,
        out_shape=jax.ShapeDtypeStruct((nb, S * BT, DOP), jnp.float32),
        grid_spec=pltpu.PrefetchScalarGridSpec(
            num_scalar_prefetch=0,
            grid=(nb,),
            in_specs=[
                pl.BlockSpec((None, S * BT, DIP), lambda b: (b, 0, 0)),
                # Constant-index weight/bias specs (re-DMA avoided; single-
                # buffering them is negligible headroom at H_p=128).
                pl.BlockSpec((DIP, HP), lambda b: (0, 0)),
                pl.BlockSpec((HP, HP), lambda b: (0, 0)),
                pl.BlockSpec((1, HP), lambda b: (0, 0)),
                pl.BlockSpec((HP, DOP), lambda b: (0, 0)),
                pl.BlockSpec((1, DOP), lambda b: (0, 0)),
            ],
            out_specs=pl.BlockSpec((None, S * BT, DOP), lambda b: (b, 0, 0)),
            scratch_shapes=[
                pltpu.VMEM((S * BT, HP), jnp.float32),   # pre / hidden states
            ],
        ),
        compiler_params=pltpu.CompilerParams(
            dimension_semantics=("parallel",),    # batch tiles are independent
            vmem_limit_bytes=vmem_limit),
    )(x_blk, wih_t, whh_t, brnn, wfc_t, bfc)

    # ---- Undo the blocked layout and the zero padding. -----------------------
    out = (out_blk.reshape(nb, S, BT, DOP)
                  .transpose(0, 2, 1, 3)
                  .reshape(BP, S, DOP))
    return out[:B, :, :D_out]


def rnn_reference(x, params, *, use_bf16=False):
    """Pure-JAX reference mirroring the PyTorch forward.

    use_bf16=False : exact f32 PyTorch semantics.
    use_bf16=True  : mirrors the kernel's bf16-operand / f32-accumulation
                     numerics (carry and biases stay f32).
    """
    w_ih, w_hh, b_ih, b_hh, w_fc, b_fc = params
    cast = (lambda a: a.astype(jnp.bfloat16)) if use_bf16 else \
           (lambda a: a.astype(jnp.float32))
    wih, whh, wfc = cast(w_ih), cast(w_hh), cast(w_fc)
    brnn = (b_ih + b_hh).astype(jnp.float32)

    def step(h, x_t):
        pre = (jnp.dot(cast(x_t), wih.T, preferred_element_type=jnp.float32)
               + brnn
               + jnp.dot(cast(h), whh.T, preferred_element_type=jnp.float32))
        h_new = jnp.maximum(pre, 0.0)
        return h_new, h_new

    B = x.shape[0]
    h0 = jnp.zeros((B, w_ih.shape[0]), jnp.float32)
    _, hs = jax.lax.scan(step, h0, jnp.transpose(x, (1, 0, 2)))   # (S, B, H)
    out = jnp.maximum(hs, 0.0)                                    # extra ReLU
    out = (jnp.dot(cast(out), wfc.T, preferred_element_type=jnp.float32)
           + b_fc.astype(jnp.float32))
    return jnp.transpose(out, (1, 0, 2))


def init_params(key):
    """Deterministic init matching PyTorch nn.RNN / nn.Linear shapes."""
    ks = jax.random.split(key, 6)
    bound = 1.0 / np.sqrt(HIDDEN_DIM)
    w_ih = jax.random.uniform(ks[0], (HIDDEN_DIM, INPUT_DIM), jnp.float32,
                              -bound, bound)
    w_hh = jax.random.uniform(ks[1], (HIDDEN_DIM, HIDDEN_DIM), jnp.float32,
                              -bound, bound)
    b_ih = jax.random.uniform(ks[2], (HIDDEN_DIM,), jnp.float32, -bound, bound)
    b_hh = jax.random.uniform(ks[3], (HIDDEN_DIM,), jnp.float32, -bound, bound)
    w_fc = jax.random.uniform(ks[4], (OUTPUT_DIM, HIDDEN_DIM), jnp.float32,
                              -bound, bound)
    b_fc = jax.random.uniform(ks[5], (OUTPUT_DIM,), jnp.float32, -bound, bound)
    return (w_ih, w_hh, b_ih, b_hh, w_fc, b_fc)


if __name__ == "__main__":
    key = jax.random.PRNGKey(0)
    k_param, k_x = jax.random.split(key)

    params = init_params(k_param)

    batch, seq = 2, 8
    x = jax.random.normal(k_x, (batch, seq, INPUT_DIM), jnp.float32)

    out = jax.jit(rnn_forward)(x, params)
    out = jax.block_until_ready(out)
    assert out.shape == (batch, seq, OUTPUT_DIM)

    # Semantic check vs the exact f32 PyTorch forward: bf16 MXU operands give
    # ~0.4% per-op rounding, so a few-percent tolerance is the expected bound.
    ref_f32 = rnn_reference(x, params, use_bf16=False)
    np.testing.assert_allclose(np.asarray(out), np.asarray(ref_f32),
                               rtol=3e-2, atol=3e-2)

    # Tight check vs a reference that mirrors the kernel's bf16-operand /
    # f32-accumulation numerics (carry in f32).
    ref_bf16 = rnn_reference(x, params, use_bf16=True)
    np.testing.assert_allclose(np.asarray(out), np.asarray(ref_bf16),
                               rtol=1e-4, atol=1e-4)

    print("KERNEL_OK")
</pallas_src>

<mosaic_0001>
module attributes {stable_mosaic.version = 11 : i64} {
  func.func @rnn_kernel(%arg0: i32, %arg1: memref<1x64x128xbf16, #tpu.memory_space<vmem>>, %arg2: memref<128x128xbf16, #tpu.memory_space<vmem>>, %arg3: memref<128x128xbf16, #tpu.memory_space<vmem>>, %arg4: memref<1x128xf32, #tpu.memory_space<vmem>>, %arg5: memref<128x128xbf16, #tpu.memory_space<vmem>>, %arg6: memref<1x128xf32, #tpu.memory_space<vmem>>, %arg7: memref<1x64x128xf32, #tpu.memory_space<vmem>>, %arg8: memref<64x128xf32, #tpu.memory_space<vmem>>) attributes {dimension_semantics = [#tpu.dimension_semantics<parallel>], iteration_bounds = array<i64: 1>, scalar_prefetch = 0 : i64, scratch_operands = 1 : i64, tpu.core_type = #tpu.core_type<tc>, window_params = [{transform_indices = @transform_0, window_bounds = array<i64: 1, 64, 128>}, {pipeline_mode = #tpu.pipeline_mode<synchronous>, transform_indices = @transform_1, window_bounds = array<i64: 128, 128>}, {pipeline_mode = #tpu.pipeline_mode<synchronous>, transform_indices = @transform_2, window_bounds = array<i64: 128, 128>}, {pipeline_mode = #tpu.pipeline_mode<synchronous>, transform_indices = @transform_3, window_bounds = array<i64: 1, 128>}, {pipeline_mode = #tpu.pipeline_mode<synchronous>, transform_indices = @transform_4, window_bounds = array<i64: 128, 128>}, {pipeline_mode = #tpu.pipeline_mode<synchronous>, transform_indices = @transform_5, window_bounds = array<i64: 1, 128>}, {transform_indices = @transform_6, window_bounds = array<i64: 1, 64, 128>}]} {
    %c0 = arith.constant 0 : index
    %c0_0 = arith.constant 0 : index
    %c0_1 = arith.constant 0 : index
    %0 = vector.load %arg1[%c0, %c0_0, %c0_1] : memref<1x64x128xbf16, #tpu.memory_space<vmem>>, vector<1x64x128xbf16>
    %1 = vector.shape_cast %0 : vector<1x64x128xbf16> to vector<64x128xbf16>
    %c0_2 = arith.constant 0 : index
    %c0_3 = arith.constant 0 : index
    %2 = vector.load %arg2[%c0_2, %c0_3] : memref<128x128xbf16, #tpu.memory_space<vmem>>, vector<128x128xbf16>
    %cst = arith.constant dense<0.000000e+00> : vector<64x128xf32>
    %3 = tpu.matmul %1, %2, %cst {dimension_numbers = #tpu.dot_dimension_numbers<[1], [0], [0], [1], [0, 0, 1, 1], [], []>} : vector<64x128xbf16>, vector<128x128xbf16>, vector<64x128xf32> -> vector<64x128xf32>
    %c0_4 = arith.constant 0 : index
    %c0_5 = arith.constant 0 : index
    %4 = vector.load %arg4[%c0_4, %c0_5] : memref<1x128xf32, #tpu.memory_space<vmem>>, vector<1x128xf32>
    %5 = vector.broadcast %4 : vector<1x128xf32> to vector<64x128xf32>
    %6 = arith.addf %3, %5 : vector<64x128xf32>
    %c0_6 = arith.constant 0 : index
    %c0_7 = arith.constant 0 : index
    %7 = vector.load %arg8[%c0_6, %c0_7] : memref<64x128xf32, #tpu.memory_space<vmem>>, vector<64x128xf32>
    tpu.vector_store %arg8[%c0_6, %c0_7], %6 {strides = array<i32>} : memref<64x128xf32, #tpu.memory_space<vmem>>, vector<64x128xf32>,
    %c0_8 = arith.constant 0 : index
    %c0_9 = arith.constant 0 : index
    %8 = vector.load %arg3[%c0_8, %c0_9] : memref<128x128xbf16, #tpu.memory_space<vmem>>, vector<128x128xbf16>
    %cst_10 = arith.constant 0.000000e+00 : f32
    %9 = vector.broadcast %cst_10 : f32 to vector<8x128xf32>
    %c0_i32 = arith.constant 0 : i32
    %c8_i32 = arith.constant 8 : i32
    %10 = arith.muli %c0_i32, %c8_i32 : i32
    %11 = tpu.assume_multiple %10, 8 : i32
    %12 = arith.truncf %9 : vector<8x128xf32> to vector<8x128xbf16>
    %cst_11 = arith.constant dense<0.000000e+00> : vector<8x128xf32>
    %13 = tpu.matmul %12, %8, %cst_11 {dimension_numbers = #tpu.dot_dimension_numbers<[1], [0], [0], [1], [0, 0, 1, 1], [], []>} : vector<8x128xbf16>, vector<128x128xbf16>, vector<8x128xf32> -> vector<8x128xf32>
    %14 = arith.index_cast %11 : i32 to index
    %c0_12 = arith.constant 0 : index
    %15 = vector.load %arg8[%14, %c0_12] : memref<64x128xf32, #tpu.memory_space<vmem>>, vector<8x128xf32>
    %16 = arith.addf %15, %13 : vector<8x128xf32>
    %cst_13 = arith.constant 0.000000e+00 : f32
    %17 = vector.broadcast %cst_13 : f32 to vector<8x128xf32>
    %18 = arith.maximumf %16, %17 : vector<8x128xf32>
    %19 = arith.index_cast %11 : i32 to index
    %c0_14 = arith.constant 0 : index
    %20 = vector.load %arg8[%19, %c0_14] : memref<64x128xf32, #tpu.memory_space<vmem>>, vector<8x128xf32>
    tpu.vector_store %arg8[%19, %c0_14], %18 {strides = array<i32>} : memref<64x128xf32, #tpu.memory_space<vmem>>, vector<8x128xf32>,
    %c1_i32 = arith.constant 1 : i32
    %c8_i32_15 = arith.constant 8 : i32
    %21 = arith.muli %c1_i32, %c8_i32_15 : i32
    %22 = tpu.assume_multiple %21, 8 : i32
    %23 = arith.truncf %18 : vector<8x128xf32> to vector<8x128xbf16>
    %cst_16 = arith.constant dense<0.000000e+00> : vector<8x128xf32>
    %24 = tpu.matmul %23, %8, %cst_16 {dimension_numbers = #tpu.dot_dimension_numbers<[1], [0], [0], [1], [0, 0, 1, 1], [], []>} : vector<8x128xbf16>, vector<128x128xbf16>, vector<8x128xf32> -> vector<8x128xf32>
    %25 = arith.index_cast %22 : i32 to index
    %c0_17 = arith.constant 0 : index
    %26 = vector.load %arg8[%25, %c0_17] : memref<64x128xf32, #tpu.memory_space<vmem>>, vector<8x128xf32>
    %27 = arith.addf %26, %24 : vector<8x128xf32>
    %cst_18 = arith.constant 0.000000e+00 : f32
    %28 = vector.broadcast %cst_18 : f32 to vector<8x128xf32>
    %29 = arith.maximumf %27, %28 : vector<8x128xf32>
    %30 = arith.index_cast %22 : i32 to index
    %c0_19 = arith.constant 0 : index
    %31 = vector.load %arg8[%30, %c0_19] : memref<64x128xf32, #tpu.memory_space<vmem>>, vector<8x128xf32>
    tpu.vector_store %arg8[%30, %c0_19], %29 {strides = array<i32>} : memref<64x128xf32, #tpu.memory_space<vmem>>, vector<8x128xf32>,
    %c2_i32 = arith.constant 2 : i32
    %c8_i32_20 = arith.constant 8 : i32
    %32 = arith.muli %c2_i32, %c8_i32_20 : i32
    %33 = tpu.assume_multiple %32, 8 : i32
    %34 = arith.truncf %29 : vector<8x128xf32> to vector<8x128xbf16>
    %cst_21 = arith.constant dense<0.000000e+00> : vector<8x128xf32>
    %35 = tpu.matmul %34, %8, %cst_21 {dimension_numbers = #tpu.dot_dimension_numbers<[1], [0], [0], [1], [0, 0, 1, 1], [], []>} : vector<8x128xbf16>, vector<128x128xbf16>, vector<8x128xf32> -> vector<8x128xf32>
    %36 = arith.index_cast %33 : i32 to index
    %c0_22 = arith.constant 0 : index
    %37 = vector.load %arg8[%36, %c0_22] : memref<64x128xf32, #tpu.memory_space<vmem>>, vector<8x128xf32>
    %38 = arith.addf %37, %35 : vector<8x128xf32>
    %cst_23 = arith.constant 0.000000e+00 : f32
    %39 = vector.broadcast %cst_23 : f32 to vector<8x128xf32>
    %40 = arith.maximumf %38, %39 : vector<8x128xf32>
    %41 = arith.index_cast %33 : i32 to index
    %c0_24 = arith.constant 0 : index
    %42 = vector.load %arg8[%41, %c0_24] : memref<64x128xf32, #tpu.memory_space<vmem>>, vector<8x128xf32>
    tpu.vector_store %arg8[%41, %c0_24], %40 {strides = array<i32>} : memref<64x128xf32, #tpu.memory_space<vmem>>, vector<8x128xf32>,
    %c3_i32 = arith.constant 3 : i32
    %c8_i32_25 = arith.constant 8 : i32
    %43 = arith.muli %c3_i32, %c8_i32_25 : i32
    %44 = tpu.assume_multiple %43, 8 : i32
    %45 = arith.truncf %40 : vector<8x128xf32> to vector<8x128xbf16>
    %cst_26 = arith.constant dense<0.000000e+00> : vector<8x128xf32>
    %46 = tpu.matmul %45, %8, %cst_26 {dimension_numbers = #tpu.dot_dimension_numbers<[1], [0], [0], [1], [0, 0, 1, 1], [], []>} : vector<8x128xbf16>, vector<128x128xbf16>, vector<8x128xf32> -> vector<8x128xf32>
    %47 = arith.index_cast %44 : i32 to index
    %c0_27 = arith.constant 0 : index
    %48 = vector.load %arg8[%47, %c0_27] : memref<64x128xf32, #tpu.memory_space<vmem>>, vector<8x128xf32>
    %49 = arith.addf %48, %46 : vector<8x128xf32>
    %cst_28 = arith.constant 0.000000e+00 : f32
    %50 = vector.broadcast %cst_28 : f32 to vector<8x128xf32>
    %51 = arith.maximumf %49, %50 : vector<8x128xf32>
    %52 = arith.index_cast %44 : i32 to index
    %c0_29 = arith.constant 0 : index
    %53 = vector.load %arg8[%52, %c0_29] : memref<64x128xf32, #tpu.memory_space<vmem>>, vector<8x128xf32>
    tpu.vector_store %arg8[%52, %c0_29], %51 {strides = array<i32>} : memref<64x128xf32, #tpu.memory_space<vmem>>, vector<8x128xf32>,
    %c4_i32 = arith.constant 4 : i32
    %c8_i32_30 = arith.constant 8 : i32
    %54 = arith.muli %c4_i32, %c8_i32_30 : i32
    %55 = tpu.assume_multiple %54, 8 : i32
    %56 = arith.truncf %51 : vector<8x128xf32> to vector<8x128xbf16>
    %cst_31 = arith.constant dense<0.000000e+00> : vector<8x128xf32>
    %57 = tpu.matmul %56, %8, %cst_31 {dimension_numbers = #tpu.dot_dimension_numbers<[1], [0], [0], [1], [0, 0, 1, 1], [], []>} : vector<8x128xbf16>, vector<128x128xbf16>, vector<8x128xf32> -> vector<8x128xf32>
    %58 = arith.index_cast %55 : i32 to index
    %c0_32 = arith.constant 0 : index
    %59 = vector.load %arg8[%58, %c0_32] : memref<64x128xf32, #tpu.memory_space<vmem>>, vector<8x128xf32>
    %60 = arith.addf %59, %57 : vector<8x128xf32>
    %cst_33 = arith.constant 0.000000e+00 : f32
    %61 = vector.broadcast %cst_33 : f32 to vector<8x128xf32>
    %62 = arith.maximumf %60, %61 : vector<8x128xf32>
    %63 = arith.index_cast %55 : i32 to index
    %c0_34 = arith.constant 0 : index
    %64 = vector.load %arg8[%63, %c0_34] : memref<64x128xf32, #tpu.memory_space<vmem>>, vector<8x128xf32>
    tpu.vector_store %arg8[%63, %c0_34], %62 {strides = array<i32>} : memref<64x128xf32, #tpu.memory_space<vmem>>, vector<8x128xf32>,
    %c5_i32 = arith.constant 5 : i32
    %c8_i32_35 = arith.constant 8 : i32
    %65 = arith.muli %c5_i32, %c8_i32_35 : i32
    %66 = tpu.assume_multiple %65, 8 : i32
    %67 = arith.truncf %62 : vector<8x128xf32> to vector<8x128xbf16>
    %cst_36 = arith.constant dense<0.000000e+00> : vector<8x128xf32>
    %68 = tpu.matmul %67, %8, %cst_36 {dimension_numbers = #tpu.dot_dimension_numbers<[1], [0], [0], [1], [0, 0, 1, 1], [], []>} : vector<8x128xbf16>, vector<128x128xbf16>, vector<8x128xf32> -> vector<8x128xf32>
    %69 = arith.index_cast %66 : i32 to index
    %c0_37 = arith.constant 0 : index
    %70 = vector.load %arg8[%69, %c0_37] : memref<64x128xf32, #tpu.memory_space<vmem>>, vector<8x128xf32>
    %71 = arith.addf %70, %68 : vector<8x128xf32>
    %cst_38 = arith.constant 0.000000e+00 : f32
    %72 = vector.broadcast %cst_38 : f32 to vector<8x128xf32>
    %73 = arith.maximumf %71, %72 : vector<8x128xf32>
    %74 = arith.index_cast %66 : i32 to index
    %c0_39 = arith.constant 0 : index
    %75 = vector.load %arg8[%74, %c0_39] : memref<64x128xf32, #tpu.memory_space<vmem>>, vector<8x128xf32>
    tpu.vector_store %arg8[%74, %c0_39], %73 {strides = array<i32>} : memref<64x128xf32, #tpu.memory_space<vmem>>, vector<8x128xf32>,
    %c6_i32 = arith.constant 6 : i32
    %c8_i32_40 = arith.constant 8 : i32
    %76 = arith.muli %c6_i32, %c8_i32_40 : i32
    %77 = tpu.assume_multiple %76, 8 : i32
    %78 = arith.truncf %73 : vector<8x128xf32> to vector<8x128xbf16>
    %cst_41 = arith.constant dense<0.000000e+00> : vector<8x128xf32>
    %79 = tpu.matmul %78, %8, %cst_41 {dimension_numbers = #tpu.dot_dimension_numbers<[1], [0], [0], [1], [0, 0, 1, 1], [], []>} : vector<8x128xbf16>, vector<128x128xbf16>, vector<8x128xf32> -> vector<8x128xf32>
    %80 = arith.index_cast %77 : i32 to index
    %c0_42 = arith.constant 0 : index
    %81 = vector.load %arg8[%80, %c0_42] : memref<64x128xf32, #tpu.memory_space<vmem>>, vector<8x128xf32>
    %82 = arith.addf %81, %79 : vector<8x128xf32>
    %cst_43 = arith.constant 0.000000e+00 : f32
    %83 = vector.broadcast %cst_43 : f32 to vector<8x128xf32>
    %84 = arith.maximumf %82, %83 : vector<8x128xf32>
    %85 = arith.index_cast %77 : i32 to index
    %c0_44 = arith.constant 0 : index
    %86 = vector.load %arg8[%85, %c0_44] : memref<64x128xf32, #tpu.memory_space<vmem>>, vector<8x128xf32>
    tpu.vector_store %arg8[%85, %c0_44], %84 {strides = array<i32>} : memref<64x128xf32, #tpu.memory_space<vmem>>, vector<8x128xf32>,
    %c7_i32 = arith.constant 7 : i32
    %c8_i32_45 = arith.constant 8 : i32
    %87 = arith.muli %c7_i32, %c8_i32_45 : i32
    %88 = tpu.assume_multiple %87, 8 : i32
    %89 = arith.truncf %84 : vector<8x128xf32> to vector<8x128xbf16>
    %cst_46 = arith.constant dense<0.000000e+00> : vector<8x128xf32>
    %90 = tpu.matmul %89, %8, %cst_46 {dimension_numbers = #tpu.dot_dimension_numbers<[1], [0], [0], [1], [0, 0, 1, 1], [], []>} : vector<8x128xbf16>, vector<128x128xbf16>, vector<8x128xf32> -> vector<8x128xf32>
    %91 = arith.index_cast %88 : i32 to index
    %c0_47 = arith.constant 0 : index
    %92 = vector.load %arg8[%91, %c0_47] : memref<64x128xf32, #tpu.memory_space<vmem>>, vector<8x128xf32>
    %93 = arith.addf %92, %90 : vector<8x128xf32>
    %cst_48 = arith.constant 0.000000e+00 : f32
    %94 = vector.broadcast %cst_48 : f32 to vector<8x128xf32>
    %95 = arith.maximumf %93, %94 : vector<8x128xf32>
    %96 = arith.index_cast %88 : i32 to index
    %c0_49 = arith.constant 0 : index
    %97 = vector.load %arg8[%96, %c0_49] : memref<64x128xf32, #tpu.memory_space<vmem>>, vector<8x128xf32>
    tpu.vector_store %arg8[%96, %c0_49], %95 {strides = array<i32>} : memref<64x128xf32, #tpu.memory_space<vmem>>, vector<8x128xf32>,
    %c8_i32_50 = arith.constant 8 : i32
    %c0_51 = arith.constant 0 : index
    %c0_52 = arith.constant 0 : index
    %98 = vector.load %arg8[%c0_51, %c0_52] : memref<64x128xf32, #tpu.memory_space<vmem>>, vector<64x128xf32>
    %99 = arith.truncf %98 : vector<64x128xf32> to vector<64x128xbf16>
    %c0_53 = arith.constant 0 : index
    %c0_54 = arith.constant 0 : index
    %100 = vector.load %arg5[%c0_53, %c0_54] : memref<128x128xbf16, #tpu.memory_space<vmem>>, vector<128x128xbf16>
    %cst_55 = arith.constant dense<0.000000e+00> : vector<64x128xf32>
    %101 = tpu.matmul %99, %100, %cst_55 {dimension_numbers = #tpu.dot_dimension_numbers<[1], [0], [0], [1], [0, 0, 1, 1], [], []>} : vector<64x128xbf16>, vector<128x128xbf16>, vector<64x128xf32> -> vector<64x128xf32>
    %c0_56 = arith.constant 0 : index
    %c0_57 = arith.constant 0 : index
    %102 = vector.load %arg6[%c0_56, %c0_57] : memref<1x128xf32, #tpu.memory_space<vmem>>, vector<1x128xf32>
    %103 = vector.broadcast %102 : vector<1x128xf32> to vector<64x128xf32>
    %104 = arith.addf %101, %103 : vector<64x128xf32>
    %c0_58 = arith.constant 0 : index
    %c0_59 = arith.constant 0 : index
    %c0_60 = arith.constant 0 : index
    %105 = vector.load %arg7[%c0_58, %c0_59, %c0_60] : memref<1x64x128xf32, #tpu.memory_space<vmem>>, vector<1x64x128xf32>
    %106 = vector.shape_cast %105 : vector<1x64x128xf32> to vector<64x128xf32>
    %107 = vector.shape_cast %104 : vector<64x128xf32> to vector<1x64x128xf32>
    tpu.vector_store %arg7[%c0_58, %c0_59, %c0_60], %107 {strides = array<i32>} : memref<1x64x128xf32, #tpu.memory_space<vmem>>, vector<1x64x128xf32>,
    return
  }
  func.func @transform_0(%arg0: i32) -> (i32, i32, i32) {
    %c0_i32 = arith.constant 0 : i32
    %c0_i32_0 = arith.constant 0 : i32
    %c0_i32_1 = arith.constant 0 : i32
    return %arg0, %c0_i32, %c0_i32_0 : i32, i32, i32
  }
  func.func @transform_1(%arg0: i32) -> (i32, i32) {
    %c0_i32 = arith.constant 0 : i32
    %c0_i32_0 = arith.constant 0 : i32
    %c0_i32_1 = arith.constant 0 : i32
    return %c0_i32, %c0_i32_0 : i32, i32
  }
  func.func @transform_2(%arg0: i32) -> (i32, i32) {
    %c0_i32 = arith.constant 0 : i32
    %c0_i32_0 = arith.constant 0 : i32
    %c0_i32_1 = arith.constant 0 : i32
    return %c0_i32, %c0_i32_0 : i32, i32
  }
  func.func @transform_3(%arg0: i32) -> (i32, i32) {
    %c0_i32 = arith.constant 0 : i32
    %c0_i32_0 = arith.constant 0 : i32
    %c0_i32_1 = arith.constant 0 : i32
    return %c0_i32, %c0_i32_0 : i32, i32
  }
  func.func @transform_4(%arg0: i32) -> (i32, i32) {
    %c0_i32 = arith.constant 0 : i32
    %c0_i32_0 = arith.constant 0 : i32
    %c0_i32_1 = arith.constant 0 : i32
    return %c0_i32, %c0_i32_0 : i32, i32
  }
  func.func @transform_5(%arg0: i32) -> (i32, i32) {
    %c0_i32 = arith.constant 0 : i32
    %c0_i32_0 = arith.constant 0 : i32
    %c0_i32_1 = arith.constant 0 : i32
    return %c0_i32, %c0_i32_0 : i32, i32
  }
  func.func @transform_6(%arg0: i32) -> (i32, i32, i32) {
    %c0_i32 = arith.constant 0 : i32
    %c0_i32_0 = arith.constant 0 : i32
    %c0_i32_1 = arith.constant 0 : i32
    return %arg0, %c0_i32, %c0_i32_0 : i32, i32, i32
  }
}

</mosaic_0001>

<bundles_post_ra>
// kernel: rnn_forward.1
= control target key start
LH: loop header
LB: loop body
LE: loop exit
PB: predicated region body
PF: predicated region fallthrough
CT: control target
= control target key end

     0   :  { %v1155_v1 = vmov 0.0   ;;  %vm1156_vm0 = vmmov 0   ;;  %v1157_v20 = vmov 0   ;;  %s1505_s1 = inlined_call_operand.vmem [shape: bf16[128,128], index: 1, kind: input, shape index: {}]   ;;  %s1506_s2 = inlined_call_operand.vmem [shape: bf16[128,128], index: 2, kind: input, shape index: {}]   ;;  %s1507_s0 = inlined_call_operand.vmem [shape: bf16[1,64,128], index: 0, kind: input, shape index: {}]   ;;  %s1508_s3 = inlined_call_operand.vmem [shape: f32[1,128], index: 3, kind: input, shape index: {}]   ;;  %s1509_s4 = inlined_call_operand.vmem [shape: bf16[128,128], index: 4, kind: input, shape index: {}]   ;;  %s1510_s5 = inlined_call_operand.vmem [shape: f32[1,128], index: 5, kind: input, shape index: {}]   ;;  %s1511_s6 = inlined_call_operand.vmem [shape: f32[1,64,128], index: 6, kind: output, shape index: {}]  }
   0x1   :  { %v1127_v0 = vld [vmem:[%s1505_s1] sm:$0xff]   ;;  %940 = vmatprep.subr.bf16.mxu1 %v1155_v1  ;;  %956 = vmatprep.mubr.msk.bf16.mxu1 %vm1156_vm0, %v1155_v1  ;;  %v1129_v3 = vld [vmem:[%s1505_s1 + $0x8] sm:$0xff]   ;;  %v1131_v5 = vld [vmem:[%s1505_s1 + $0x10] sm:$0xff]  }
   0x2   :  { %v1202_v2 = vld [vmem:[%s1506_s2] sm:$0xff]   ;;  %916 = vmatprep.subr.bf16.mxu0 %v1127_v0  ;;  %v1211_v4 = vld [vmem:[%s1506_s2 + $0x8] sm:$0xff]   ;;  %v1221_v6 = vld [vmem:[%s1506_s2 + $0x10] sm:$0xff]  }
   0x3   :  { %917 = vmatpush3.bf16.msra.mxu0 %v1127_v0  ;;  %941 = vmatpush3.bf16.msra.mxu1 %v1202_v2  ;;  %v1133_v7 = vld [vmem:[%s1505_s1 + $0x18] sm:$0xff]   ;;  %v1135_v9 = vld [vmem:[%s1505_s1 + $0x20] sm:$0xff]   ;;  %v1137_v11 = vld [vmem:[%s1505_s1 + $0x28] sm:$0xff]  }
   0x4   :  { %918 = vmatprep.subr.bf16.mxu0 %v1129_v3  ;;  %942 = vmatprep.subr.bf16.mxu1 %v1155_v1  ;;  %v1231_v8 = vld [vmem:[%s1506_s2 + $0x18] sm:$0xff]   ;;  %v1240_v10 = vld [vmem:[%s1506_s2 + $0x20] sm:$0xff]   ;;  %v1254_v13 = vld [vmem:[%s1506_s2 + $0x28] sm:$0xff]  }
   0x5   :  { %v1143_v12 = vld [vmem:[%s1507_s0] sm:$0xff]   ;;  %v1139_v14 = vld [vmem:[%s1505_s1 + $0x30] sm:$0xff]   ;;  %v1141_v16 = vld [vmem:[%s1505_s1 + $0x38] sm:$0xff]  }
   0x6   :  { %932 = vmatprep.mubr.bf16.mxu0 %v1143_v12  ;;  %v1264_v15 = vld [vmem:[%s1506_s2 + $0x30] sm:$0xff]   ;;  %v1274_v17 = vld [vmem:[%s1506_s2 + $0x38] sm:$0xff]   ;;  %v1144_v18 = vld [vmem:[%s1507_s0 + $0x8] sm:$0xff]  }
   0x7   :  { %919 = vmatpush3.bf16.msra.mxu0 %v1129_v3  ;;  %943 = vmatpush3.bf16.msra.mxu1 %v1211_v4  ;;  %v1145_v19 = vld [vmem:[%s1507_s0 + $0x10] sm:$0xff]   ;;  %v1146_v21 = vld [vmem:[%s1507_s0 + $0x18] sm:$0xff]   ;;  %v790_v22 = vld [vmem:[%s1508_s3] ss:$0 sm:$0xff] }
   0x8   :  { %920 = vmatprep.subr.bf16.mxu0 %v1131_v5  ;;  %944 = vmatprep.subr.bf16.mxu1 %v1155_v1 }
   0xb   :  { %921 = vmatpush3.bf16.msra.mxu0 %v1131_v5  ;;  %945 = vmatpush3.bf16.msra.mxu1 %v1221_v6 }
   0xc   :  { %922 = vmatprep.subr.bf16.mxu0 %v1133_v7  ;;  %946 = vmatprep.subr.bf16.mxu1 %v1155_v1 }
   0xf   :  { %923 = vmatpush3.bf16.msra.mxu0 %v1133_v7  ;;  %947 = vmatpush3.bf16.msra.mxu1 %v1231_v8 }
  0x10   :  { %924 = vmatprep.subr.bf16.mxu0 %v1135_v9  ;;  %948 = vmatprep.subr.bf16.mxu1 %v1155_v1 }
  0x13   :  { %925 = vmatpush3.bf16.msra.mxu0 %v1135_v9  ;;  %949 = vmatpush3.bf16.msra.mxu1 %v1240_v10 }
  0x14   :  { %926 = vmatprep.subr.bf16.mxu0 %v1137_v11  ;;  %950 = vmatprep.subr.bf16.mxu1 %v1155_v1 }
  0x17   :  { %927 = vmatpush3.bf16.msra.mxu0 %v1137_v11  ;;  %951 = vmatpush3.bf16.msra.mxu1 %v1254_v13 }
  0x18   :  { %928 = vmatprep.subr.bf16.mxu0 %v1139_v14  ;;  %952 = vmatprep.subr.bf16.mxu1 %v1155_v1 }
  0x1b   :  { %929 = vmatpush3.bf16.msra.mxu0 %v1139_v14  ;;  %953 = vmatpush3.bf16.msra.mxu1 %v1264_v15 }
  0x1c   :  { %930 = vmatprep.subr.bf16.mxu0 %v1141_v16  ;;  %954 = vmatprep.subr.bf16.mxu1 %v1155_v1 }
  0x1f   :  { %931 = vmatpush3.bf16.msra.mxu0 %v1141_v16  ;;  %955 = vmatpush3.bf16.msra.mxu1 %v1274_v17 }
  0x20   :  { %960 = vmatprep.subr.bf16.mxu0 %v1155_v1  ;;  %980 = vmatprep.subr.bf16.mxu1 %v1155_v1 }
  0x22   :  { %933 = vmatmul.mubr.bf16.vlgmr.msra.gmra.mrb[0].mxu0 %v1144_v18  ;;  %957 = vmatmul.mubr.bf16.vlgmr.msra.gmra.mrb[0].mxu1 %v1157_v20 }
  0x23   :  { %961 = vmatpush3.bf16.msra.mxu0 %v1202_v2  ;;  %936 = vmatprep.mubr.bf16.mxu0 %v1145_v19 }
  0x24   :  { %962 = vmatprep.subr.bf16.mxu0 %v1155_v1  ;;  %981 = vmatpush3.bf16.msra.mxu1 %v1202_v2 }
  0x25   :  { %982 = vmatprep.subr.bf16.mxu1 %v1155_v1  ;;  %996 = vmatprep.mubr.msk.bf16.mxu1 %vm1156_vm0, %v1155_v1 }
  0x27   :  { %963 = vmatpush3.bf16.msra.mxu0 %v1211_v4 }
  0x28   :  { %964 = vmatprep.subr.bf16.mxu0 %v1155_v1  ;;  %983 = vmatpush3.bf16.msra.mxu1 %v1211_v4 }
  0x29   :  { %984 = vmatprep.subr.bf16.mxu1 %v1155_v1 }
  0x2a   :  { %937 = vmatmul.mubr.bf16.gmra.mrb[4].mxu0 %v1146_v21  ;;  %v1150_v21 = vld [vmem:[%s1509_s4 + $0x18] sm:$0xff]  }
  0x2b   :  { %965 = vmatpush3.bf16.msra.mxu0 %v1221_v6  ;;  %976 = vmatprep.mubr.msk.bf16.mxu0 %vm1156_vm0, %v1155_v1 }
  0x2c   :  { %966 = vmatprep.subr.bf16.mxu0 %v1155_v1  ;;  %985 = vmatpush3.bf16.msra.mxu1 %v1221_v6 }
  0x2d   :  { %986 = vmatprep.subr.bf16.mxu1 %v1155_v1 }
  0x2f   :  { %967 = vmatpush3.bf16.msra.mxu0 %v1231_v8 }
  0x30   :  { %968 = vmatprep.subr.bf16.mxu0 %v1155_v1  ;;  %987 = vmatpush3.bf16.msra.mxu1 %v1231_v8 }
  0x31   :  { %988 = vmatprep.subr.bf16.mxu1 %v1155_v1 }
  0x33   :  { %969 = vmatpush3.bf16.msra.mxu0 %v1240_v10 }
  0x34   :  { %970 = vmatprep.subr.bf16.mxu0 %v1155_v1  ;;  %989 = vmatpush3.bf16.msra.mxu1 %v1240_v10 }
  0x35   :  { %990 = vmatprep.subr.bf16.mxu1 %v1155_v1 }
  0x37   :  { %971 = vmatpush3.bf16.msra.mxu0 %v1254_v13 }
  0x38   :  { %972 = vmatprep.subr.bf16.mxu0 %v1155_v1  ;;  %991 = vmatpush3.bf16.msra.mxu1 %v1254_v13 }
  0x39   :  { %992 = vmatprep.subr.bf16.mxu1 %v1155_v1 }
  0x3b   :  { %973 = vmatpush3.bf16.msra.mxu0 %v1264_v15 }
  0x3c   :  { %974 = vmatprep.subr.bf16.mxu0 %v1155_v1  ;;  %993 = vmatpush3.bf16.msra.mxu1 %v1264_v15 }
  0x3d   :  { %994 = vmatprep.subr.bf16.mxu1 %v1155_v1 }
  0x3f   :  { %975 = vmatpush3.bf16.msra.mxu0 %v1274_v17 }
  0x40   :  { %995 = vmatpush3.bf16.msra.mxu1 %v1274_v17  ;;  %1000 = vmatprep.subr.bf16.mxu0 %v1155_v1 }
  0x41   :  { %1020 = vmatprep.subr.bf16.mxu1 %v1155_v1 }
  0xf5   :  { %v934_v23 = vpop.f32.mrb[0].mxu0  ;;  %v298_v24 = vpop.f32.mrb[0].mxu1 }
  0xf6   :  { %v1328_v25 = vadd.f32 %v934_v23, %v790_v22  ;;  %v161_v26 = vpop.f32.mrb[1].mxu0  ;;  %v958_v27 = vpop.f32.mrb[1].mxu1  ;;  %v1152_v23 = vld [vmem:[%s1509_s4 + $0x28] sm:$0xff]  }
  0xf7   :  { %v162_v28 = vadd.f32 %v790_v22, %v161_v26  ;;  %v935_v29 = vpop.f32.mrb[2].mxu0  ;;  %v301_v30 = vpop.f32.mrb[2].mxu1 }
  0xf8   :  { %v1330_v31 = vadd.f32 %v935_v29, %v790_v22  ;;  %v164_v32 = vpop.f32.mrb[3].mxu0  ;;  %v959_v33 = vpop.f32.mrb[3].mxu1 }
  0xf9   :  { %v305_v34 = vadd.f32 %v298_v24, %v162_v28  ;;  %v165_v35 = vadd.f32 %v790_v22, %v164_v32  ;;  %v1153_v24 = vld [vmem:[%s1509_s4 + $0x30] sm:$0xff]  }
  0xfb   :  { %v1332_v36 = vmax.f32 %v305_v34, 0.0 }
  0xfd   :  { %v308_v37 = vpack.c.bf16 %v1332_v36, %v1332_v36  ;;  %v938_v38 = vpop.f32.mrb[4].mxu0 }
  0xfe   :  { %v1336_v39 = vadd.f32 %v938_v38, %v790_v22  ;;  %v177_v40 = vpop.f32.mrb[5].mxu0 }
  0xff   :  { %977 = vmatmul.mubr.bf16.vlgmr.msra.gmra.mrb[8].mxu0 %v308_v37  ;;  %v1338_v41 = vadd.f32 %v790_v22, %v177_v40  ;;  %v939_v42 = vpop.f32.mrb[6].mxu0 }
 0x100   :  { %v1340_v43 = vadd.f32 %v939_v42, %v790_v22  ;;  %v180_v44 = vpop.f32.mrb[7].mxu0  ;;  %1001 = vmatpush3.bf16.msra.mxu0 %v1202_v2  ;;  %1016 = vmatprep.mubr.msk.bf16.mxu0 %vm1156_vm0, %v1155_v1 }
 0x101   :  { %v1345_v45 = vadd.f32 %v790_v22, %v180_v44  ;;  %1002 = vmatprep.subr.bf16.mxu0 %v1155_v1  ;;  %v1151_v22 = vld [vmem:[%s1509_s4 + $0x20] sm:$0xff]  }
 0x104   :  { %1003 = vmatpush3.bf16.msra.mxu0 %v1211_v4 }
 0x105   :  { %1004 = vmatprep.subr.bf16.mxu0 %v1155_v1 }
 0x108   :  { %1005 = vmatpush3.bf16.msra.mxu0 %v1221_v6 }
 0x109   :  { %1006 = vmatprep.subr.bf16.mxu0 %v1155_v1 }
 0x10c   :  { %1007 = vmatpush3.bf16.msra.mxu0 %v1231_v8 }
 0x10d   :  { %1008 = vmatprep.subr.bf16.mxu0 %v1155_v1 }
 0x110   :  { %1009 = vmatpush3.bf16.msra.mxu0 %v1240_v10 }
 0x111   :  { %1010 = vmatprep.subr.bf16.mxu0 %v1155_v1 }
 0x114   :  { %1011 = vmatpush3.bf16.msra.mxu0 %v1254_v13 }
 0x115   :  { %1012 = vmatprep.subr.bf16.mxu0 %v1155_v1 }
 0x118   :  { %1013 = vmatpush3.bf16.msra.mxu0 %v1264_v15 }
 0x119   :  { %1014 = vmatprep.subr.bf16.mxu0 %v1155_v1 }
 0x11c   :  { %1015 = vmatpush3.bf16.msra.mxu0 %v1274_v17 }
 0x11d   :  { %1040 = vmatprep.subr.bf16.mxu0 %v1155_v1 }
 0x1d2   :  { %v343_v46 = vpop.f32.mrb[8].mxu0 }
 0x1d3   :  { %v351_v47 = vadd.f32 %v343_v46, %v165_v35  ;;  %v978_v48 = vpop.f32.mrb[9].mxu0  ;;  %v811_v35 = vld [vmem:[%s1510_s5] ss:$0 sm:$0xff] }
 0x1d4   :  { %v346_v49 = vpop.f32.mrb[10].mxu0 }
 0x1d5   :  { %v1362_v50 = vmax.f32 %v351_v47, 0.0  ;;  %v979_v51 = vpop.f32.mrb[11].mxu0 }
 0x1d7   :  { %v354_v52 = vpack.c.bf16 %v1362_v50, %v1362_v50 }
 0x1d9   :  { %997 = vmatmul.mubr.bf16.vlgmr.msra.gmra.mrb[4].mxu1 %v354_v52 }
 0x1da   :  { %1021 = vmatpush3.bf16.msra.mxu1 %v1202_v2  ;;  %1036 = vmatprep.mubr.msk.bf16.mxu1 %vm1156_vm0, %v1155_v1 }
 0x1db   :  { %1022 = vmatprep.subr.bf16.mxu1 %v1155_v1 }
 0x1de   :  { %1023 = vmatpush3.bf16.msra.mxu1 %v1211_v4 }
 0x1df   :  { %1024 = vmatprep.subr.bf16.mxu1 %v1155_v1 }
 0x1e2   :  { %1025 = vmatpush3.bf16.msra.mxu1 %v1221_v6 }
 0x1e3   :  { %1026 = vmatprep.subr.bf16.mxu1 %v1155_v1 }
 0x1e6   :  { %1027 = vmatpush3.bf16.msra.mxu1 %v1231_v8 }
 0x1e7   :  { %1028 = vmatprep.subr.bf16.mxu1 %v1155_v1 }
 0x1ea   :  { %1029 = vmatpush3.bf16.msra.mxu1 %v1240_v10 }
 0x1eb   :  { %1030 = vmatprep.subr.bf16.mxu1 %v1155_v1 }
 0x1ee   :  { %1031 = vmatpush3.bf16.msra.mxu1 %v1254_v13 }
 0x1ef   :  { %1032 = vmatprep.subr.bf16.mxu1 %v1155_v1 }
 0x1f2   :  { %1033 = vmatpush3.bf16.msra.mxu1 %v1264_v15 }
 0x1f3   :  { %1034 = vmatprep.subr.bf16.mxu1 %v1155_v1 }
 0x1f6   :  { %1035 = vmatpush3.bf16.msra.mxu1 %v1274_v17 }
 0x1f7   :  { %1060 = vmatprep.subr.bf16.mxu1 %v1155_v1 }
 0x2ac   :  { %v389_v53 = vpop.f32.mrb[4].mxu1 }
 0x2ad   :  { %v397_v54 = vadd.f32 %v389_v53, %v1328_v25  ;;  %v998_v55 = vpop.f32.mrb[5].mxu1  ;;  %v1154_v25 = vld [vmem:[%s1509_s4 + $0x38] sm:$0xff]  }
 0x2ae   :  { %v392_v56 = vpop.f32.mrb[6].mxu1 }
 0x2af   :  { %v1385_v57 = vmax.f32 %v397_v54, 0.0  ;;  %v999_v58 = vpop.f32.mrb[7].mxu1 }
 0x2b1   :  { %v400_v59 = vpack.c.bf16 %v1385_v57, %v1385_v57 }
 0x2b3   :  { %1017 = vmatmul.mubr.bf16.vlgmr.msra.gmra.mrb[12].mxu0 %v400_v59 }
 0x2b4   :  { %1041 = vmatpush3.bf16.msra.mxu0 %v1202_v2  ;;  %1056 = vmatprep.mubr.msk.bf16.mxu0 %vm1156_vm0, %v1155_v1 }
 0x2b5   :  { %1042 = vmatprep.subr.bf16.mxu0 %v1155_v1 }
 0x2b8   :  { %1043 = vmatpush3.bf16.msra.mxu0 %v1211_v4 }
 0x2b9   :  { %1044 = vmatprep.subr.bf16.mxu0 %v1155_v1 }
 0x2bc   :  { %1045 = vmatpush3.bf16.msra.mxu0 %v1221_v6 }
 0x2bd   :  { %1046 = vmatprep.subr.bf16.mxu0 %v1155_v1 }
 0x2c0   :  { %1047 = vmatpush3.bf16.msra.mxu0 %v1231_v8 }
 0x2c1   :  { %1048 = vmatprep.subr.bf16.mxu0 %v1155_v1 }
 0x2c4   :  { %1049 = vmatpush3.bf16.msra.mxu0 %v1240_v10 }
 0x2c5   :  { %1050 = vmatprep.subr.bf16.mxu0 %v1155_v1 }
 0x2c8   :  { %1051 = vmatpush3.bf16.msra.mxu0 %v1254_v13 }
 0x2c9   :  { %1052 = vmatprep.subr.bf16.mxu0 %v1155_v1 }
 0x2cc   :  { %1053 = vmatpush3.bf16.msra.mxu0 %v1264_v15 }
 0x2cd   :  { %1054 = vmatprep.subr.bf16.mxu0 %v1155_v1 }
 0x2d0   :  { %1055 = vmatpush3.bf16.msra.mxu0 %v1274_v17 }
 0x2d1   :  { %1080 = vmatprep.subr.bf16.mxu0 %v1155_v1 }
 0x386   :  { %v435_v60 = vpop.f32.mrb[12].mxu0 }
 0x387   :  { %v443_v61 = vadd.f32 %v435_v60, %v1330_v31  ;;  %v1018_v62 = vpop.f32.mrb[13].mxu0 }
 0x388   :  { %v438_v63 = vpop.f32.mrb[14].mxu0 }
 0x389   :  { %v1408_v0 = vmax.f32 %v443_v61, 0.0  ;;  %v1019_v3 = vpop.f32.mrb[15].mxu0 }
 0x38b   :  { %v446_v5 = vpack.c.bf16 %v1408_v0, %v1408_v0  ;;  %v639_v26 = vpack.c.bf16 %v1408_v0, %v1385_v57 }
 0x38d   :  { %1037 = vmatmul.mubr.bf16.vlgmr.msra.gmra.mrb[8].mxu1 %v446_v5 }
 0x38e   :  { %1061 = vmatpush3.bf16.msra.mxu1 %v1202_v2  ;;  %1076 = vmatprep.mubr.msk.bf16.mxu1 %vm1156_vm0, %v1155_v1 }
 0x38f   :  { %1062 = vmatprep.subr.bf16.mxu1 %v1155_v1 }
 0x392   :  { %1063 = vmatpush3.bf16.msra.mxu1 %v1211_v4 }
 0x393   :  { %1064 = vmatprep.subr.bf16.mxu1 %v1155_v1 }
 0x396   :  { %1065 = vmatpush3.bf16.msra.mxu1 %v1221_v6 }
 0x397   :  { %1066 = vmatprep.subr.bf16.mxu1 %v1155_v1 }
 0x39a   :  { %1067 = vmatpush3.bf16.msra.mxu1 %v1231_v8 }
 0x39b   :  { %1068 = vmatprep.subr.bf16.mxu1 %v1155_v1 }
 0x39e   :  { %1069 = vmatpush3.bf16.msra.mxu1 %v1240_v10 }
 0x39f   :  { %1070 = vmatprep.subr.bf16.mxu1 %v1155_v1 }
 0x3a2   :  { %1071 = vmatpush3.bf16.msra.mxu1 %v1254_v13 }
 0x3a3   :  { %1072 = vmatprep.subr.bf16.mxu1 %v1155_v1 }
 0x3a6   :  { %1073 = vmatpush3.bf16.msra.mxu1 %v1264_v15 }
 0x3a7   :  { %1074 = vmatprep.subr.bf16.mxu1 %v1155_v1 }
 0x3aa   :  { %1075 = vmatpush3.bf16.msra.mxu1 %v1274_v17 }
 0x460   :  { %v481_v7 = vpop.f32.mrb[8].mxu1 }
 0x461   :  { %v489_v9 = vadd.f32 %v481_v7, %v1338_v41  ;;  %v1038_v11 = vpop.f32.mrb[9].mxu1 }
 0x462   :  { %v484_v12 = vpop.f32.mrb[10].mxu1 }
 0x463   :  { %v490_v14 = vmax.f32 %v489_v9, 0.0  ;;  %v1039_v16 = vpop.f32.mrb[11].mxu1 }
 0x465   :  { %v492_v18 = vpack.c.bf16 %v490_v14, %v490_v14 }
 0x467   :  { %1057 = vmatmul.mubr.bf16.vlgmr.msra.gmra.mrb[16].mxu0 %v492_v18 }
 0x468   :  { %1081 = vmatpush3.bf16.msra.mxu0 %v1202_v2  ;;  %1096 = vmatprep.mubr.msk.bf16.mxu0 %vm1156_vm0, %v1155_v1  ;;  %v1147_v2 = vld [vmem:[%s1509_s4] sm:$0xff]  }
 0x469   :  { %1082 = vmatprep.subr.bf16.mxu0 %v1155_v1  ;;  %1100 = vmatprep.subr.bf16.mxu1 %v1147_v2 }
 0x46c   :  { %1083 = vmatpush3.bf16.msra.mxu0 %v1211_v4 }
 0x46d   :  { %1084 = vmatprep.subr.bf16.mxu0 %v1155_v1 }
 0x470   :  { %1085 = vmatpush3.bf16.msra.mxu0 %v1221_v6 }
 0x471   :  { %1086 = vmatprep.subr.bf16.mxu0 %v1155_v1 }
 0x474   :  { %1087 = vmatpush3.bf16.msra.mxu0 %v1231_v8 }
 0x475   :  { %1088 = vmatprep.subr.bf16.mxu0 %v1155_v1 }
 0x478   :  { %1089 = vmatpush3.bf16.msra.mxu0 %v1240_v10 }
 0x479   :  { %1090 = vmatprep.subr.bf16.mxu0 %v1155_v1 }
 0x47c   :  { %1091 = vmatpush3.bf16.msra.mxu0 %v1254_v13 }
 0x47d   :  { %1092 = vmatprep.subr.bf16.mxu0 %v1155_v1 }
 0x480   :  { %1093 = vmatpush3.bf16.msra.mxu0 %v1264_v15  ;;  %v1148_v15 = vld [vmem:[%s1509_s4 + $0x8] sm:$0xff]  }
 0x481   :  { %1094 = vmatprep.subr.bf16.mxu0 %v1155_v1  ;;  %v638_v1 = vpack.c.bf16 %v1362_v50, %v1332_v36 }
 0x484   :  { %1095 = vmatpush3.bf16.msra.mxu0 %v1274_v17  ;;  %v1149_v17 = vld [vmem:[%s1509_s4 + $0x10] sm:$0xff]  }
 0x53a   :  { %v527_v4 = vpop.f32.mrb[16].mxu0 }
 0x53b   :  { %v535_v6 = vadd.f32 %v527_v4, %v1345_v45  ;;  %v1058_v8 = vpop.f32.mrb[17].mxu0 }
 0x53c   :  { %v530_v10 = vpop.f32.mrb[18].mxu0 }
 0x53d   :  { %v536_v19 = vmax.f32 %v535_v6, 0.0  ;;  %v1059_v13 = vpop.f32.mrb[19].mxu0 }
 0x53f   :  { %v538_v20 = vpack.c.bf16 %v536_v19, %v536_v19  ;;  %v640_v27 = vpack.c.bf16 %v536_v19, %v490_v14 }
 0x541   :  { %1077 = vmatmul.mubr.bf16.vlgmr.msra.gmra.mrb[12].mxu1 %v538_v20 }
 0x542   :  { %1101 = vmatpush3.bf16.msra.mxu1 %v1147_v2  ;;  %1116 = vmatprep.mubr.bf16.mxu1 %v638_v1 }
 0x543   :  { %1102 = vmatprep.subr.bf16.mxu1 %v1148_v15 }
 0x546   :  { %1103 = vmatpush3.bf16.msra.mxu1 %v1148_v15 }
 0x547   :  { %1104 = vmatprep.subr.bf16.mxu1 %v1149_v17 }
 0x54a   :  { %1105 = vmatpush3.bf16.msra.mxu1 %v1149_v17 }
 0x54b   :  { %1106 = vmatprep.subr.bf16.mxu1 %v1150_v21 }
 0x54e   :  { %1107 = vmatpush3.bf16.msra.mxu1 %v1150_v21 }
 0x54f   :  { %1108 = vmatprep.subr.bf16.mxu1 %v1151_v22 }
 0x552   :  { %1109 = vmatpush3.bf16.msra.mxu1 %v1151_v22 }
 0x553   :  { %1110 = vmatprep.subr.bf16.mxu1 %v1152_v23 }
 0x556   :  { %1111 = vmatpush3.bf16.msra.mxu1 %v1152_v23 }
 0x557   :  { %1112 = vmatprep.subr.bf16.mxu1 %v1153_v24 }
 0x55a   :  { %1113 = vmatpush3.bf16.msra.mxu1 %v1153_v24 }
 0x55b   :  { %1114 = vmatprep.subr.bf16.mxu1 %v1154_v25 }
 0x55e   :  { %1115 = vmatpush3.bf16.msra.mxu1 %v1154_v25 }
 0x561   :  { %1117 = vmatmul.mubr.bf16.vlgmr.msra.gmra.mrb[16].mxu1 %v639_v26 }
 0x562   :  { %1120 = vmatprep.mubr.bf16.mxu1 %v640_v27 }
 0x614   :  { %v573_v28 = vpop.f32.mrb[12].mxu1 }
 0x615   :  { %v581_v29 = vadd.f32 %v573_v28, %v1336_v39  ;;  %v1078_v30 = vpop.f32.mrb[13].mxu1 }
 0x616   :  { %v576_v31 = vpop.f32.mrb[14].mxu1 }
 0x617   :  { %v582_v32 = vmax.f32 %v581_v29, 0.0  ;;  %v1079_v33 = vpop.f32.mrb[15].mxu1 }
 0x619   :  { %v584_v34 = vpack.c.bf16 %v582_v32, %v582_v32 }
 0x61b   :  { %1097 = vmatmul.mubr.bf16.vlgmr.msra.gmra.mrb[20].mxu0 %v584_v34 }
 0x634   :  { %v1118_v36 = vpop.f32.mrb[16].mxu1 }
 0x635   :  { %v756_v37 = vadd.f32 %v1118_v36, %v811_v35  ;;  %v747_v38 = vpop.f32.mrb[17].mxu1 }
 0x636   :  { %v748_v40 = vadd.f32 %v811_v35, %v747_v38  ;;  %v1119_v41 = vpop.f32.mrb[18].mxu1 }
 0x637   :  { %780 = vst [vmem:[%s1511_s6 + $0x10] sm:$0xff] %v756_v37  ;;  %v759_v39 = vadd.f32 %v1119_v41, %v811_v35  ;;  %v750_v42 = vpop.f32.mrb[19].mxu1 }
 0x638   :  { %778 = vst [vmem:[%s1511_s6] sm:$0xff] %v748_v40  ;;  %v751_v44 = vadd.f32 %v811_v35, %v750_v42 }
 0x639   :  { %781 = vst [vmem:[%s1511_s6 + $0x18] sm:$0xff] %v759_v39 }
 0x63a   :  { %779 = vst [vmem:[%s1511_s6 + $0x8] sm:$0xff] %v751_v44 }
 0x6ee   :  { %v619_v45 = vpop.f32.mrb[20].mxu0 }
 0x6ef   :  { %v627_v46 = vadd.f32 %v619_v45, %v1340_v43  ;;  %v1098_v47 = vpop.f32.mrb[21].mxu0 }
 0x6f0   :  { %v622_v48 = vpop.f32.mrb[22].mxu0 }
 0x6f1   :  { %v628_v49 = vmax.f32 %v627_v46, 0.0  ;;  %v1099_v50 = vpop.f32.mrb[23].mxu0 }
 0x6f3   :  { %v641_v51 = vpack.c.bf16 %v628_v49, %v582_v32 }
 0x6f5   :  { %1121 = vmatmul.mubr.bf16.gmra.mrb[20].mxu1 %v641_v51 }
 0x7c8   :  { %v1122_v52 = vpop.f32.mrb[20].mxu1 }
 0x7c9   :  { %v772_v53 = vadd.f32 %v1122_v52, %v811_v35  ;;  %v763_v54 = vpop.f32.mrb[21].mxu1 }
 0x7ca   :  { %v764_v55 = vadd.f32 %v811_v35, %v763_v54  ;;  %v1123_v56 = vpop.f32.mrb[22].mxu1 }
 0x7cb   :  { %784 = vst [vmem:[%s1511_s6 + $0x30] sm:$0xff] %v772_v53  ;;  %v775_v57 = vadd.f32 %v1123_v56, %v811_v35  ;;  %v766_v58 = vpop.f32.mrb[23].mxu1 }
 0x7cc   :  { %782 = vst [vmem:[%s1511_s6 + $0x20] sm:$0xff] %v764_v55  ;;  %v767_v43 = vadd.f32 %v811_v35, %v766_v58 }
 0x7cd   :  { %785 = vst [vmem:[%s1511_s6 + $0x38] sm:$0xff] %v775_v57 }
 0x7ce   :  { %783 = vst [vmem:[%s1511_s6 + $0x28] sm:$0xff] %v767_v43 }

</bundles_post_ra>
